<compile_context>
chip_gen: v7x
topology: tpu7x:2x2x1
jax: 0.10.0
libtpu: 0.0.40
codegen_flags: <defaults>
</compile_context>

<pallas_src>
import jax
import jax.numpy as jnp
from jax.experimental import pallas as pl
from jax.experimental.pallas import tpu as pltpu


def _sigmoid_mul_kernel(x_ref, g_ref, o_ref):
    # Sigmoid (exp) goes to the EUP issue slot; the broadcast-multiply runs on
    # the VPU.  Gate math is kept in f32 even when x is a narrower dtype.
    gate = jax.nn.sigmoid(g_ref[...].astype(jnp.float32))          # (bc, 1)
    x = x_ref[...].astype(jnp.float32)                             # (bc, HW)
    o_ref[...] = (x * gate).astype(o_ref.dtype)


def _pick_num_blocks(nc: int) -> int:
    # Prefer a handful of pipelined steps (overlap input DMA with output
    # writeback) but never more than ~4 — per-step overhead would dominate
    # this ~1.8 MB, purely bandwidth-bound op.
    for nb in (4, 3, 2):
        bc = nc // nb
        if nc % nb == 0 and bc % 8 == 0:
            return nb
    return 1


def sigmoid_mul(x92: jax.Array, x96: jax.Array) -> jax.Array:
    """out = x92 * sigmoid(x96), with x96 broadcast over the spatial dims.

    x92: (N, C, H, W), x96: (N, C, 1, 1). Returns (N, C, H, W).
    """
    N, C, H, W = x92.shape
    assert x96.shape == (N, C, 1, 1)

    NC = N * C
    HW = H * W

    x2d = x92.reshape(NC, HW)
    g2d = x96.reshape(NC, 1)

    num_blocks = _pick_num_blocks(NC)
    block_c = NC // num_blocks

    itemsize = jnp.dtype(x92.dtype).itemsize
    cost = pl.CostEstimate(
        flops=NC * HW + 4 * NC,                   # mul/elem + gate math
        transcendentals=NC,                       # one exp per channel
        bytes_accessed=2 * NC * HW * itemsize + NC * itemsize,
    )

    out2d = pl.pallas_call(
        _sigmoid_mul_kernel,
        out_shape=jax.ShapeDtypeStruct((NC, HW), x92.dtype),
        grid=(num_blocks,),
        in_specs=[
            # (block_c, HW): block_c is a multiple of 8, HW is the full last
            # dim, so the (8, 128) tiling constraint is satisfied.
            pl.BlockSpec((block_c, HW), lambda i: (i, 0)),
            # Per-block gate slice; stays tiny and keeps the sigmoid in-kernel.
            pl.BlockSpec((block_c, 1), lambda i: (i, 0)),
        ],
        out_specs=pl.BlockSpec((block_c, HW), lambda i: (i, 0)),
        compiler_params=pltpu.CompilerParams(
            # Independent blocks -> megacore sharding on v7x; no-op elsewhere.
            dimension_semantics=("parallel",),
        ),
        cost_estimate=cost,
    )(x2d, g2d)

    return out2d.reshape(N, C, H, W)


if __name__ == "__main__":
    key = jax.random.PRNGKey(0)
    k1, k2 = jax.random.split(key)

    # Shapes from the PyTorch module.
    x92 = jax.random.normal(k1, (1, 288, 28, 28), dtype=jnp.float32)
    x96 = jax.random.normal(k2, (1, 288, 1, 1), dtype=jnp.float32)

    out = sigmoid_mul(x92, x96)
    out = jax.block_until_ready(out)

    # Reference check against plain JAX.
    ref = x92 * jax.nn.sigmoid(x96)
    assert out.shape == (1, 288, 28, 28)
    assert jnp.allclose(out, ref, atol=1e-6, rtol=1e-6)

    print("KERNEL_OK")
</pallas_src>

<mosaic_0001>
module attributes {stable_mosaic.version = 11 : i64} {
  func.func @_sigmoid_mul_kernel(%arg0: i32, %arg1: memref<72x784xf32, #tpu.memory_space<vmem>>, %arg2: memref<72x1xf32, #tpu.memory_space<vmem>>, %arg3: memref<72x784xf32, #tpu.memory_space<vmem>>) attributes {dimension_semantics = [#tpu.dimension_semantics<parallel>], iteration_bounds = array<i64: 4>, scalar_prefetch = 0 : i64, scratch_operands = 0 : i64, tpu.core_type = #tpu.core_type<tc>, window_params = [{transform_indices = @transform_0, window_bounds = array<i64: 72, 784>}, {transform_indices = @transform_1, window_bounds = array<i64: 72, 1>}, {transform_indices = @transform_2, window_bounds = array<i64: 72, 784>}]} {
    %c0 = arith.constant 0 : index
    %c0_0 = arith.constant 0 : index
    %0 = vector.load %arg2[%c0, %c0_0] : memref<72x1xf32, #tpu.memory_space<vmem>>, vector<72x1xf32>
    %1 = arith.negf %0 : vector<72x1xf32>
    %2 = math.exp %1 : vector<72x1xf32>
    %cst = arith.constant 1.000000e+00 : f32
    %3 = vector.broadcast %cst : f32 to vector<72x1xf32>
    %4 = arith.addf %3, %2 : vector<72x1xf32>
    %5 = arith.divf %3, %4 : vector<72x1xf32>
    %c0_1 = arith.constant 0 : index
    %c0_2 = arith.constant 0 : index
    %6 = vector.load %arg1[%c0_1, %c0_2] : memref<72x784xf32, #tpu.memory_space<vmem>>, vector<72x784xf32>
    %7 = vector.broadcast %5 : vector<72x1xf32> to vector<72x784xf32>
    %8 = arith.mulf %6, %7 : vector<72x784xf32>
    %c0_3 = arith.constant 0 : index
    %c0_4 = arith.constant 0 : index
    %9 = vector.load %arg3[%c0_3, %c0_4] : memref<72x784xf32, #tpu.memory_space<vmem>>, vector<72x784xf32>
    tpu.vector_store %arg3[%c0_3, %c0_4], %8 {strides = array<i32>} : memref<72x784xf32, #tpu.memory_space<vmem>>, vector<72x784xf32>,
    return
  }
  func.func @transform_0(%arg0: i32) -> (i32, i32) {
    %c0_i32 = arith.constant 0 : i32
    %c0_i32_0 = arith.constant 0 : i32
    return %arg0, %c0_i32 : i32, i32
  }
  func.func @transform_1(%arg0: i32) -> (i32, i32) {
    %c0_i32 = arith.constant 0 : i32
    %c0_i32_0 = arith.constant 0 : i32
    return %arg0, %c0_i32 : i32, i32
  }
  func.func @transform_2(%arg0: i32) -> (i32, i32) {
    %c0_i32 = arith.constant 0 : i32
    %c0_i32_0 = arith.constant 0 : i32
    return %arg0, %c0_i32 : i32, i32
  }
}

</mosaic_0001>

<bundles_post_ra>
// kernel: tpu_custom_call.1
= control target key start
LH: loop header
LB: loop body
LE: loop exit
PB: predicated region body
PF: predicated region fallthrough
CT: control target
= control target key end

     0   :  { %7 = vsyncpa [#allocation3], 0  ;;  %s1124_s0 = inlined_call_operand.hbm [shape: f32[288,784], index: 0, kind: input, shape index: {}]   ;;  %s1125_s1 = inlined_call_operand.vmem [shape: f32[288,1], index: 1, kind: input, shape index: {}]   ;;  %s1126_s2 = inlined_call_operand.hbm [shape: f32[288,784], index: 2, kind: output, shape index: {}]  }
   0x1   :  { %9 = vsyncpa [#allocation3 + $0x1], 0 }
   0x2   :  { %10 = vsyncpa [#allocation4], 0 }
   0x3   :  { %12 = vsyncpa [#allocation4 + $0x1], 0  ;;  %s818_s9 = smov 0   ;;  %s820_s10 = smov 0  }
   0x4   :  { %s822_s11 = smov 0   ;;  %s824_s12 = smov 0  }
   0x5 LB: > { %s839_s13 = sadd.s32 4294967295, %s794_s12   ;;  %s585_s14 = sadd.s32 4294967294, %s794_s12   ;;  %s794_s12 = sphi %s824_s12, %s1138_s12   ;;  %s790_s11 = sphi %s822_s11, %s1137_s11   ;;  %s786_s10 = sphi %s820_s10, %s1136_s10   ;;  %s782_s9 = sphi %s818_s9, %s1135_s9  }
   0x6   : > { %s843_s15 = sadd.s32 1, %s794_s12   ;;  %s25_s16 = sadd.s32 1, %s790_s11 }
   0x7   : > { %s22_s17 = ssub.s32 %s794_s12, %s843_s15  ;;  %p32_p0 = scmp.ne.s32.totalorder %s790_s11, %s786_s10 }
   0x8   : > { %p23_p1 = scmp.eq.s32.totalorder %s22_s17, 0  ;;  %p33_p2 = scmp.eq.s32.totalorder %s794_s12, 0 }
   0x9   : > { %p38_p3 = scmp.ne.s32.totalorder %s786_s10, %s782_s9  ;;  %p39_p4 = scmp.eq.s32.totalorder %s839_s13, 0 }
   0xa   : > { %s855_s18 = scalar_select %p23_p1, %s790_s11, %s25_s16  }
   0xb   : > { %p34_p5 = por %p33_p2, %p32_p0  ;;  %p857_p6 = por %p39_p4, %p38_p3 }
   0xc   : > { %p88_p7 = scmp.eq.s32.totalorder %s839_s13, 3  ;;  %p94_p8 = scmp.eq.s32.totalorder %s585_s14, 3 }
   0xd   : > { %p619_p9 = scmp.lt.s32.totalorder %s794_s12, 4  ;;  %s114_s22 = sand.u32 1, %s790_s11  }
   0xe   : > { %p863_p10 = por %p88_p7, %p32_p0  ;;  %p867_p11 = por %p94_p8, %p38_p3 }
   0xf   : > { %s603_s23 = smul.u32 504, %s114_s22  ;;  %p873_p12 = pnand %p619_p9, %p34_p5 }
  0x10   : > { %s1129_s20 = scalar_select %p863_p10, 1, 0 }
  0x11   : > { %s1130_s21 = scalar_select %p867_p11, 1, 0 }
  0x12   : > { %s620_s24 = smul.u32 8064, %s794_s12  ;;  %s118_s29 = scalar_lea.vmem [#allocation2], %s603_s23 }
  0x13   : > { %s126_s30 = sshll.u32 %s118_s29, 4  ;;  %s885_s3 = scalar_lea.sflag [#allocation3], %s114_s22  ;;  %s882_s30 = int_to_ptr.vmem [resolvable:$true] %s126_s30 }
  0x14   : > { %s880_s28 = scalar_lea.hbm %s1124_s0, %s620_s24  ;;  %p700_p1 = pneg %p873_p12 }
  0x15   : > { %s698_s4 = scalar_lea.hbm %s880_s28, 8064  ;;  %s703_s7 = scalar_lea.hbm %s1124_s0, 32256 }
  0x16   : > { %p699_p0 = scmp.ne.s32.totalorder %s880_s28, %s698_s4  ;;  %p704_p4 = scmp.lt.u32.totalorder %s880_s28, %s1124_s0 }
  0x17   : > { %p705_p5 = scmp.lt.u32.totalorder %s703_s7, %s698_s4  ;;  %p707_p8 = scmp.lt.u32.totalorder %s698_s4, %s880_s28 }
  0x18   : > { %p701_p2 = pnand %p700_p1, %p699_p0 }
  0x19   : > { %p706_p7 = por %p705_p5, %p704_p4 }
  0x1a   : > { %p702_p3 = pneg %p701_p2 }
  0x1b   : > { %p708_p9 = por %p707_p8, %p706_p7 }
  0x1d   : > { %p709_p13 = pnand %p708_p9, %p702_p3 }
  0x1f   : > { %712 = shalt.err (!%p709_p13)
}
  0x20   : > { %s713_s16 = scalar_lea.vmem %s882_s30, 8064  ;;  %s796_s17 = smov [#allocation2]  }
  0x21   : > { %p714_p0 = scmp.ne.s32.totalorder %s882_s30, %s713_s16  ;;  %s718_s22 = sshll.u32 %s796_s17, 4  ;;  %s719_s22 = int_to_ptr.vmem [resolvable:$false] %s718_s22 }
  0x22   : > { %s720_s23 = scalar_lea.vmem %s719_s22, 16128  ;;  %p721_p10 = scmp.lt.s32.totalorder %s882_s30, %s719_s22 }
  0x23   : > { %p716_p2 = pnand %p714_p0, %p700_p1  ;;  %p722_p4 = scmp.lt.s32.totalorder %s720_s23, %s713_s16 }
  0x25   : > { %p717_p11 = pneg %p716_p2  ;;  %p723_p5 = por %p722_p4, %p721_p10 }
  0x27   : > { %p724_p7 = pnand %p723_p5, %p717_p11 }
  0x29   : > { %727 = shalt.err (!%p724_p7)
}
  0x2a   : > { %s797_s24 = smov 896   ;;  %s798_s26 = smov 56  }
  0x2b   : > { %614 = dma.hbm_to_vmem [thread:$0]  (!%p873_p12), %s880_s28, 8064, %s882_s30, %s885_s3, %s797_s24, %s797_s24, %s798_s26  }
  0x2c   : > { %p143_p13 = scmp.lt.s32.totalorder %s794_s12, 5  ;;  %p1132_p1 = scmp.ge.s32.totalorder %s794_s12, 1 }
  0x2e   : > { %p144_p3 = pnand %p1132_p1, %p143_p13 }
  0x2f   : > { %s917_s27 = sand.u32 (!%p144_p3), 1, %s786_s10  }
  0x30   : > { %147 = sbr.rel (%p144_p3) target bundleno = 266 (0x10a), region = 28  ;;  %s150_s4 = scalar_lea.sflag (!%p144_p3), [#allocation3], %s917_s27 }
  0x31   : > { %s605_s29 = smul.u32 (!%p144_p3), 504, %s917_s27 }
  0x33   : > { %s923_s5 = scalar_lea.vmem (!%p144_p3), [#allocation2], %s605_s29 }
  0x37   : > { %773 = dma.done.wait (%p857_p6), %s150_s4, 8064  }
  0x38   : > { %775 = vsyncadd (%p857_p6), %s150_s4, 4294959232  ;;  %s180_s25 = smul.u32 9, %s839_s13  ;;  %v799_v0 = vmov 0   ;;  %v264_v46 = vld [vmem:[%s923_s5 + $0x70] sm:$0xff]  ;;  %v265_v47 = vld [vmem:[%s923_s5 + $0x78] sm:$0xff]  ;;  %vm427_vm0 = vcmask 130048  }
  0x39   : > { %661 = vset.pattern.permute.xlu1 %v799_v0  ;;  %660 = vset.pattern.permute.xlu0 %v799_v0  ;;  %v266_v48 = vld [vmem:[%s923_s5 + $0x80] sm:$0xff]  ;;  %v267_v49 = vld [vmem:[%s923_s5 + $0x88] sm:$0xff]  ;;  %v268_v50 = vld [vmem:[%s923_s5 + $0x90] sm:$0xff]  ;;  %s959_s19 = scalar_lea.vmem [#allocation5], %s605_s29  ;;  %s621_s7 = smul.u32 8064, %s839_s13 }
  0x3a   : > { %p181_p10 = scmp.lt.s32.totalorder %s180_s25, 35  ;;  %v269_v51 = vld [vmem:[%s923_s5 + $0x98] sm:$0xff]  ;;  %v270_v52 = vld [vmem:[%s923_s5 + $0xa0] sm:$0xff]  ;;  %v251_v54 = vld [vmem:[%s923_s5 + $0x8] sm:$0xff]  ;;  %s500_s8 = sshll.u32 %s959_s19, 4  ;;  %s1073_s8 = int_to_ptr.vmem [resolvable:$true] %s500_s8 }
  0x3b   : > { %v250_v53 = vld [vmem:[%s923_s5] sm:$0xff]  ;;  %v252_v55 = vld [vmem:[%s923_s5 + $0x10] sm:$0xff]  ;;  %v253_v56 = vld [vmem:[%s923_s5 + $0x18] sm:$0xff]  ;;  %s1071_s17 = scalar_lea.hbm %s1126_s2, %s621_s7  ;;  %s486_s13 = scalar_lea.sflag [#allocation4], %s917_s27 }
  0x3c   : > { %s1140_s25 = smov (!%p181_p10, %s180_s25), 35  ;;  %v254_v57 = vld [vmem:[%s923_s5 + $0x20] sm:$0xff]  ;;  %v255_v58 = vld [vmem:[%s923_s5 + $0x28] sm:$0xff]  ;;  %v256_v59 = vld [vmem:[%s923_s5 + $0x30] sm:$0xff]  ;;  %s728_s22 = scalar_lea.vmem %s1073_s8, 8064 }
  0x3d   : > { %s590_s28 = sshll.u32 %s1140_s25, 3  ;;  %v271_v61 = vld [vmem:[%s923_s5 + $0xa8] sm:$0xff]  ;;  %v272_v62 = vld [vmem:[%s923_s5 + $0xb0] sm:$0xff]  ;;  %v273_v63 = vld [vmem:[%s923_s5 + $0xb8] sm:$0xff]  ;;  %p729_p6 = scmp.ne.s32.totalorder %s1073_s8, %s728_s22 }
  0x3e   : > { %s184_s6 = scalar_lea.vmem %s1125_s1, %s590_s28  ;;  %v274_v0 = vld [vmem:[%s923_s5 + $0xc0] sm:$0xff]  ;;  %p1133_p11 = scmp.ne.s32.totalorder %s1129_s20, 0 }
  0x3f   : > { %v189_v1 = vld [vmem:[%s184_s6 + $0x10] sm:$0xff]  ;;  %v187_v2 = vld [vmem:[%s184_s6] sm:$0xff]  ;;  %v190_v3 = vld [vmem:[%s184_s6 + $0x18] sm:$0xff]  ;;  %s800_s23 = smov [#allocation5]  }
  0x40   : > { %v593_v4 = vmul.f32 -1.442695, %v189_v1  ;;  %v591_v5 = vmul.f32 -1.442695, %v187_v2  ;;  %v594_v6 = vmul.f32 -1.442695, %v190_v3  ;;  %p730_p12 = pnand %p729_p6, %p1133_p11 }
  0x41   : > { %v188_v7 = vld [vmem:[%s184_s6 + $0x8] sm:$0xff]  ;;  %v191_v9 = vld [vmem:[%s184_s6 + $0x20] sm:$0xff]  ;;  %v194_v13 = vld [vmem:[%s184_s6 + $0x38] sm:$0xff]  ;;  %s732_s24 = sshll.u32 %s800_s23, 4  ;;  %s733_s24 = int_to_ptr.vmem [resolvable:$false] %s732_s24 }
  0x42   : > { %v192_v8 = vld [vmem:[%s184_s6 + $0x28] sm:$0xff]  ;;  %662 = vpow2.f32 %v593_v4  ;;  %v592_v10 = vmul.f32 -1.442695, %v188_v7  ;;  %v595_v12 = vmul.f32 -1.442695, %v191_v9  ;;  %v193_v14 = vld [vmem:[%s184_s6 + $0x30] sm:$0xff]  ;;  %p731_p8 = pneg %p730_p12  ;;  %p735_p9 = scmp.lt.s32.totalorder %s1073_s8, %s733_s24 }
  0x43   : > { %v596_v11 = vmul.f32 -1.442695, %v192_v8  ;;  %664 = vpow2.f32 %v591_v5  ;;  %v598_v15 = vmul.f32 -1.442695, %v194_v13  ;;  %v597_v16 = vmul.f32 -1.442695, %v193_v14 }
  0x44   : > { %666 = vpow2.f32 %v594_v6  ;;  %v195_v17 = vld [vmem:[%s184_s6 + $0x40] sm:$0xff]  ;;  %v276_v7 = vld [vmem:[%s923_s5 + $0xd0] sm:$0xff]  ;;  %v277_v8 = vld [vmem:[%s923_s5 + $0xd8] sm:$0xff]  ;;  %s734_s26 = scalar_lea.vmem %s733_s24, 16128 }
  0x45   : > { %668 = vpow2.f32 %v592_v10  ;;  %v599_v18 = vmul.f32 -1.442695, %v195_v17  ;;  %v275_v6 = vld [vmem:[%s923_s5 + $0xc8] sm:$0xff]  ;;  %v257_v13 = vld [vmem:[%s923_s5 + $0x38] sm:$0xff]  ;;  %v258_v14 = vld [vmem:[%s923_s5 + $0x40] sm:$0xff]  ;;  %p736_p0 = scmp.lt.s32.totalorder %s734_s26, %s728_s22 }
  0x46   : > { %670 = vpow2.f32 %v596_v11 }
  0x47   : > { %672 = vpow2.f32 %v595_v12  ;;  %p737_p2 = por %p736_p0, %p735_p9 }
  0x48   : > { %674 = vpow2.f32 %v598_v15  ;;  %v259_v15 = vld [vmem:[%s923_s5 + $0x48] sm:$0xff] }
  0x49   : > { %676 = vpow2.f32 %v597_v16  ;;  %p738_p4 = pnand %p737_p2, %p731_p8 }
  0x4a   : > { %678 = vpow2.f32 %v599_v18 }
  0x4c   : > { %v663_v19 = vpop.eup %662 }
  0x4d   : > { %v665_v20 = vpop.eup %664  ;;  %v225_v21 = vadd.f32 1.0, %v663_v19 }
  0x4e   : > { %v667_v22 = vpop.eup %666  ;;  %v223_v23 = vadd.f32 1.0, %v665_v20  ;;  %v260_v20 = vld [vmem:[%s923_s5 + $0x50] sm:$0xff] }
  0x4f   : > { %v669_v24 = vpop.eup %668  ;;  %680 = vrcp.f32 %v225_v21  ;;  %v226_v25 = vadd.f32 1.0, %v667_v22  ;;  %v261_v21 = vld [vmem:[%s923_s5 + $0x58] sm:$0xff]  ;;  %v262_v22 = vld [vmem:[%s923_s5 + $0x60] sm:$0xff] }
  0x50   : > { %v671_v26 = vpop.eup %670  ;;  %682 = vrcp.f32 %v223_v23  ;;  %v224_v27 = vadd.f32 1.0, %v669_v24 }
  0x51   : > { %v673_v28 = vpop.eup %672  ;;  %684 = vrcp.f32 %v226_v25  ;;  %v228_v29 = vadd.f32 1.0, %v671_v26  ;;  %v263_v26 = vld [vmem:[%s923_s5 + $0x68] sm:$0xff] }
  0x52   : > { %v675_v30 = vpop.eup %674  ;;  %686 = vrcp.f32 %v224_v27  ;;  %v227_v31 = vadd.f32 1.0, %v673_v28  ;;  %v285_v27 = vld [vmem:[%s923_s5 + $0x118] sm:$0xff]  ;;  %v286_v28 = vld [vmem:[%s923_s5 + $0x120] sm:$0xff] }
  0x53   : > { %v677_v32 = vpop.eup %676  ;;  %688 = vrcp.f32 %v228_v29  ;;  %v230_v33 = vadd.f32 1.0, %v675_v30 }
  0x54   : > { %690 = vrcp.f32 %v227_v31  ;;  %v229_v34 = vadd.f32 1.0, %v677_v32  ;;  %v679_v35 = vpop.eup %678 }
  0x55   : > { %692 = vrcp.f32 %v230_v33  ;;  %v231_v38 = vadd.f32 1.0, %v679_v35  ;;  %v288_v35 = vld [vmem:[%s923_s5 + $0x130] sm:$0xff] }
  0x56   : > { %694 = vrcp.f32 %v229_v34  ;;  %v287_v34 = vld [vmem:[%s923_s5 + $0x128] sm:$0xff] }
  0x57   : > { %696 = vrcp.f32 %v231_v38 }
  0x59   : > { %v681_v36 = vpop.eup %680 }
  0x5a   : > { %v683_v37 = vpop.eup %682  ;;  %325 = vperm.xlu1 %661, %v681_v36   ;;  %v289_v36 = vld [vmem:[%s923_s5 + $0x138] sm:$0xff] }
  0x5b   : > { %v685_v39 = vpop.eup %684  ;;  %315 = vperm.xlu0 %660, %v683_v37  }
  0x5c   : > { %v687_v40 = vpop.eup %686 }
  0x5d   : > { %v689_v41 = vpop.eup %688 }
  0x5e   : > { %330 = vperm.xlu1 %661, %v685_v39   ;;  %v691_v42 = vpop.eup %690 }
  0x5f   : > { %320 = vperm.xlu0 %660, %v687_v40   ;;  %v693_v43 = vpop.eup %692 }
  0x60   : > { %v695_v44 = vpop.eup %694 }
  0x61   : > { %v697_v45 = vpop.eup %696 }
  0x62   : > { %340 = vperm.xlu1 %661, %v689_v41   ;;  %v290_v41 = vld [vmem:[%s923_s5 + $0x140] sm:$0xff] }
  0x63   : > { %335 = vperm.xlu0 %660, %v691_v42   ;;  %v291_v42 = vld [vmem:[%s923_s5 + $0x148] sm:$0xff] }
  0x66   : > { %350 = vperm.xlu1 %661, %v693_v43   ;;  %v278_v43 = vld [vmem:[%s923_s5 + $0xe0] sm:$0xff] }
  0x67   : > { %345 = vperm.xlu0 %660, %v695_v44  }
  0x6b   : > { %355 = vperm.xlu0 %660, %v697_v45  }
  0xd9   : > { %v326_v60 = vpop.permute.xlu1 %325 }
  0xda   : > { %v372_v1 = vmul.f32 %v326_v60, %v264_v46  ;;  %v373_v2 = vmul.f32 %v326_v60, %v265_v47  ;;  %v374_v3 = vmul.f32 %v326_v60, %v266_v48  ;;  %v375_v4 = vmul.f32 %v326_v60, %v267_v49  ;;  %v316_v5 = vpop.permute.xlu0 %315  ;;  %v279_v48 = vld [vmem:[%s923_s5 + $0xe8] sm:$0xff]  ;;  %v280_v49 = vld [vmem:[%s923_s5 + $0xf0] sm:$0xff] }
  0xdb   : > { %v376_v9 = vmul.f32 %v326_v60, %v268_v50  ;;  %v377_v10 = vmul.f32 %v326_v60, %v269_v51  ;;  %v378_v11 = vmul.f32 %v326_v60, %v270_v52  ;;  %v358_v12 = vmul.f32 %v316_v5, %v250_v53  ;;  %v281_v50 = vld [vmem:[%s923_s5 + $0xf8] sm:$0xff] }
  0xdc   : > { %436 = vst [vmem:[%s959_s19 + $0x70] sm:$0xff] %v372_v1  ;;  %437 = vst [vmem:[%s959_s19 + $0x78] sm:$0xff] %v373_v2  ;;  %v359_v16 = vmul.f32 %v316_v5, %v251_v54  ;;  %v360_v17 = vmul.f32 %v316_v5, %v252_v55  ;;  %v361_v18 = vmul.f32 %v316_v5, %v253_v56  ;;  %v282_v54 = vld [vmem:[%s923_s5 + $0x100] sm:$0xff]  ;;  %v283_v55 = vld [vmem:[%s923_s5 + $0x108] sm:$0xff] }
  0xdd   : > { %438 = vst [vmem:[%s959_s19 + $0x80] sm:$0xff] %v374_v3  ;;  %439 = vst [vmem:[%s959_s19 + $0x88] sm:$0xff] %v375_v4  ;;  %v362_v19 = vmul.f32 %v316_v5, %v254_v57  ;;  %v363_v23 = vmul.f32 %v316_v5, %v255_v58  ;;  %v364_v24 = vmul.f32 %v316_v5, %v256_v59  ;;  %v331_v25 = vpop.permute.xlu1 %330  ;;  %v284_v56 = vld [vmem:[%s923_s5 + $0x110] sm:$0xff]  ;;  %v302_v5 = vld [vmem:[%s923_s5 + $0x1a0] sm:$0xff] }
  0xde   : > { %440 = vst [vmem:[%s959_s19 + $0x90] sm:$0xff] %v376_v9  ;;  %441 = vst [vmem:[%s959_s19 + $0x98] sm:$0xff] %v377_v10  ;;  %v379_v29 = vmul.f32 %v331_v25, %v271_v61  ;;  %v380_v30 = vmul.f32 %v331_v25, %v272_v62  ;;  %v381_v31 = vmul.f32 %v331_v25, %v273_v63  ;;  %v321_v33 = vpop.permute.xlu0 %320  ;;  %v299_v62 = vld [vmem:[%s923_s5 + $0x188] sm:$0xff]  ;;  %v300_v63 = vld [vmem:[%s923_s5 + $0x190] sm:$0xff] }
  0xdf   : > { %442 = vst.msk [vmem:[%s959_s19 + $0xa0] sm:$0xff] %vm427_vm0, %v378_v11  ;;  %421 = vst [vmem:[%s959_s19] sm:$0xff] %v358_v12  ;;  %v382_v32 = vmul.f32 %v331_v25, %v274_v0  ;;  %v383_v37 = vmul.f32 %v331_v25, %v275_v6  ;;  %v384_v38 = vmul.f32 %v331_v25, %v276_v7  ;;  %v301_v0 = vld [vmem:[%s923_s5 + $0x198] sm:$0xff]  ;;  %v303_v6 = vld [vmem:[%s923_s5 + $0x1a8] sm:$0xff] }
  0xe0   : > { %422 = vst [vmem:[%s959_s19 + $0x8] sm:$0xff] %v359_v16  ;;  %423 = vst [vmem:[%s959_s19 + $0x10] sm:$0xff] %v360_v17  ;;  %v385_v39 = vmul.f32 %v331_v25, %v277_v8  ;;  %v365_v40 = vmul.f32 %v321_v33, %v257_v13  ;;  %v366_v44 = vmul.f32 %v321_v33, %v258_v14  ;;  %v304_v7 = vld [vmem:[%s923_s5 + $0x1b0] sm:$0xff]  ;;  %v305_v12 = vld [vmem:[%s923_s5 + $0x1b8] sm:$0xff] }
  0xe1   : > { %424 = vst [vmem:[%s959_s19 + $0x18] sm:$0xff] %v361_v18  ;;  %425 = vst [vmem:[%s959_s19 + $0x20] sm:$0xff] %v362_v19  ;;  %v367_v45 = vmul.f32 %v321_v33, %v259_v15  ;;  %v368_v46 = vmul.f32 %v321_v33, %v260_v20  ;;  %v369_v47 = vmul.f32 %v321_v33, %v261_v21  ;;  %v341_v53 = vpop.permute.xlu1 %340  ;;  %v292_v13 = vld [vmem:[%s923_s5 + $0x150] sm:$0xff]  ;;  %v293_v14 = vld [vmem:[%s923_s5 + $0x158] sm:$0xff] }
  0xe2   : > { %426 = vst [vmem:[%s959_s19 + $0x28] sm:$0xff] %v363_v23  ;;  %428 = vst.msk [vmem:[%s959_s19 + $0x30] sm:$0xff] %vm427_vm0, %v364_v24  ;;  %v370_v51 = vmul.f32 %v321_v33, %v262_v22  ;;  %v371_v52 = vmul.f32 %v321_v33, %v263_v26  ;;  %v393_v57 = vmul.f32 %v341_v53, %v285_v27  ;;  %v336_v61 = vpop.permute.xlu0 %335  ;;  %v294_v18 = vld [vmem:[%s923_s5 + $0x160] sm:$0xff]  ;;  %v295_v19 = vld [vmem:[%s923_s5 + $0x168] sm:$0xff] }
  0xe3   : > { %443 = vst [vmem:[%s959_s19 + $0xa8] sm:$0xff] %v379_v29  ;;  %444 = vst [vmem:[%s959_s19 + $0xb0] sm:$0xff] %v380_v30  ;;  %v394_v58 = vmul.f32 %v341_v53, %v286_v28  ;;  %v395_v59 = vmul.f32 %v341_v53, %v287_v34  ;;  %v396_v60 = vmul.f32 %v341_v53, %v288_v35  ;;  %v296_v20 = vld [vmem:[%s923_s5 + $0x170] sm:$0xff]  ;;  %v297_v25 = vld [vmem:[%s923_s5 + $0x178] sm:$0xff] }
  0xe4   : > { %445 = vst [vmem:[%s959_s19 + $0xb8] sm:$0xff] %v381_v31  ;;  %446 = vst [vmem:[%s959_s19 + $0xc0] sm:$0xff] %v382_v32  ;;  %v397_v1 = vmul.f32 %v341_v53, %v289_v36  ;;  %v398_v2 = vmul.f32 %v341_v53, %v290_v41  ;;  %v399_v3 = vmul.f32 %v341_v53, %v291_v42  ;;  %v298_v26 = vld [vmem:[%s923_s5 + $0x180] sm:$0xff] }
  0xe5   : > { %447 = vst [vmem:[%s959_s19 + $0xc8] sm:$0xff] %v383_v37  ;;  %448 = vst [vmem:[%s959_s19 + $0xd0] sm:$0xff] %v384_v38  ;;  %v386_v4 = vmul.f32 %v336_v61, %v278_v43  ;;  %v387_v8 = vmul.f32 %v336_v61, %v279_v48  ;;  %v388_v9 = vmul.f32 %v336_v61, %v280_v49  ;;  %v351_v17 = vpop.permute.xlu1 %350  ;;  %v306_v32 = vld [vmem:[%s923_s5 + $0x1c0] sm:$0xff]  ;;  %v307_v37 = vld [vmem:[%s923_s5 + $0x1c8] sm:$0xff] }
  0xe6   : > { %449 = vst.msk [vmem:[%s959_s19 + $0xd8] sm:$0xff] %vm427_vm0, %v385_v39  ;;  %429 = vst [vmem:[%s959_s19 + $0x38] sm:$0xff] %v365_v40  ;;  %v389_v10 = vmul.f32 %v336_v61, %v281_v50  ;;  %v390_v11 = vmul.f32 %v336_v61, %v282_v54  ;;  %v391_v15 = vmul.f32 %v336_v61, %v283_v55  ;;  %v346_v27 = vpop.permute.xlu0 %345  ;;  %v308_v38 = vld [vmem:[%s923_s5 + $0x1d0] sm:$0xff]  ;;  %v309_v39 = vld [vmem:[%s923_s5 + $0x1d8] sm:$0xff] }
  0xe7   : > { %430 = vst [vmem:[%s959_s19 + $0x40] sm:$0xff] %v366_v44  ;;  %431 = vst [vmem:[%s959_s19 + $0x48] sm:$0xff] %v367_v45  ;;  %v392_v16 = vmul.f32 %v336_v61, %v284_v56  ;;  %v407_v21 = vmul.f32 %v351_v17, %v299_v62  ;;  %v408_v22 = vmul.f32 %v351_v17, %v300_v63  ;;  %v310_v42 = vld [vmem:[%s923_s5 + $0x1e0] sm:$0xff]  ;;  %v311_v43 = vld [vmem:[%s923_s5 + $0x1e8] sm:$0xff] }
  0xe8   : > { %432 = vst [vmem:[%s959_s19 + $0x50] sm:$0xff] %v368_v46  ;;  %433 = vst [vmem:[%s959_s19 + $0x58] sm:$0xff] %v369_v47  ;;  %v409_v23 = vmul.f32 %v351_v17, %v301_v0  ;;  %v410_v24 = vmul.f32 %v351_v17, %v302_v5  ;;  %v411_v28 = vmul.f32 %v351_v17, %v303_v6  ;;  %v312_v44 = vld [vmem:[%s923_s5 + $0x1f0] sm:$0xff] }
  0xe9   : > { %434 = vst [vmem:[%s959_s19 + $0x60] sm:$0xff] %v370_v51  ;;  %435 = vst.msk [vmem:[%s959_s19 + $0x68] sm:$0xff] %vm427_vm0, %v371_v52  ;;  %v412_v29 = vmul.f32 %v351_v17, %v304_v7  ;;  %v413_v30 = vmul.f32 %v351_v17, %v305_v12  ;;  %v400_v31 = vmul.f32 %v346_v27, %v292_v13 }
  0xea   : > { %457 = vst [vmem:[%s959_s19 + $0x118] sm:$0xff] %v393_v57  ;;  %458 = vst [vmem:[%s959_s19 + $0x120] sm:$0xff] %v394_v58  ;;  %v401_v33 = vmul.f32 %v346_v27, %v293_v14  ;;  %v402_v34 = vmul.f32 %v346_v27, %v294_v18  ;;  %v403_v35 = vmul.f32 %v346_v27, %v295_v19  ;;  %v356_v45 = vpop.permute.xlu0 %355 }
  0xeb   : > { %459 = vst [vmem:[%s959_s19 + $0x128] sm:$0xff] %v395_v59  ;;  %460 = vst [vmem:[%s959_s19 + $0x130] sm:$0xff] %v396_v60  ;;  %v404_v36 = vmul.f32 %v346_v27, %v296_v20  ;;  %v405_v40 = vmul.f32 %v346_v27, %v297_v25  ;;  %v406_v41 = vmul.f32 %v346_v27, %v298_v26 }
  0xec   : > { %461 = vst [vmem:[%s959_s19 + $0x138] sm:$0xff] %v397_v1  ;;  %462 = vst [vmem:[%s959_s19 + $0x140] sm:$0xff] %v398_v2  ;;  %v414_v46 = vmul.f32 %v356_v45, %v306_v32  ;;  %v415_v47 = vmul.f32 %v356_v45, %v307_v37  ;;  %v416_v48 = vmul.f32 %v356_v45, %v308_v38 }
  0xed   : > { %463 = vst.msk [vmem:[%s959_s19 + $0x148] sm:$0xff] %vm427_vm0, %v399_v3  ;;  %450 = vst [vmem:[%s959_s19 + $0xe0] sm:$0xff] %v386_v4  ;;  %v417_v49 = vmul.f32 %v356_v45, %v309_v39  ;;  %v418_v50 = vmul.f32 %v356_v45, %v310_v42  ;;  %v419_v51 = vmul.f32 %v356_v45, %v311_v43 }
  0xee   : > { %451 = vst [vmem:[%s959_s19 + $0xe8] sm:$0xff] %v387_v8  ;;  %452 = vst [vmem:[%s959_s19 + $0xf0] sm:$0xff] %v388_v9  ;;  %v420_v52 = vmul.f32 %v356_v45, %v312_v44 }
  0xef   : > { %453 = vst [vmem:[%s959_s19 + $0xf8] sm:$0xff] %v389_v10  ;;  %454 = vst [vmem:[%s959_s19 + $0x100] sm:$0xff] %v390_v11 }
  0xf0   : > { %455 = vst [vmem:[%s959_s19 + $0x108] sm:$0xff] %v391_v15  ;;  %456 = vst.msk [vmem:[%s959_s19 + $0x110] sm:$0xff] %vm427_vm0, %v392_v16 }
  0xf1   : > { %471 = vst [vmem:[%s959_s19 + $0x188] sm:$0xff] %v407_v21  ;;  %472 = vst [vmem:[%s959_s19 + $0x190] sm:$0xff] %v408_v22 }
  0xf2   : > { %473 = vst [vmem:[%s959_s19 + $0x198] sm:$0xff] %v409_v23  ;;  %474 = vst [vmem:[%s959_s19 + $0x1a0] sm:$0xff] %v410_v24 }
  0xf3   : > { %475 = vst [vmem:[%s959_s19 + $0x1a8] sm:$0xff] %v411_v28  ;;  %476 = vst [vmem:[%s959_s19 + $0x1b0] sm:$0xff] %v412_v29 }
  0xf4   : > { %477 = vst.msk [vmem:[%s959_s19 + $0x1b8] sm:$0xff] %vm427_vm0, %v413_v30  ;;  %464 = vst [vmem:[%s959_s19 + $0x150] sm:$0xff] %v400_v31 }
  0xf5   : > { %465 = vst [vmem:[%s959_s19 + $0x158] sm:$0xff] %v401_v33  ;;  %466 = vst [vmem:[%s959_s19 + $0x160] sm:$0xff] %v402_v34 }
  0xf6   : > { %467 = vst [vmem:[%s959_s19 + $0x168] sm:$0xff] %v403_v35  ;;  %468 = vst [vmem:[%s959_s19 + $0x170] sm:$0xff] %v404_v36 }
  0xf7   : > { %469 = vst [vmem:[%s959_s19 + $0x178] sm:$0xff] %v405_v40  ;;  %470 = vst.msk [vmem:[%s959_s19 + $0x180] sm:$0xff] %vm427_vm0, %v406_v41 }
  0xf8   : > { %478 = vst [vmem:[%s959_s19 + $0x1c0] sm:$0xff] %v414_v46  ;;  %479 = vst [vmem:[%s959_s19 + $0x1c8] sm:$0xff] %v415_v47 }
  0xf9   : > { %480 = vst [vmem:[%s959_s19 + $0x1d0] sm:$0xff] %v416_v48  ;;  %481 = vst [vmem:[%s959_s19 + $0x1d8] sm:$0xff] %v417_v49 }
  0xfa   : > { %482 = vst [vmem:[%s959_s19 + $0x1e0] sm:$0xff] %v418_v50  ;;  %483 = vst [vmem:[%s959_s19 + $0x1e8] sm:$0xff] %v419_v51 }
  0xfb   : > { %484 = vst.msk [vmem:[%s959_s19 + $0x1f0] sm:$0xff] %vm427_vm0, %v420_v52 }
  0xfc   : > { %741 = shalt.err (!%p738_p4)
}
  0xfd   : > { %s742_s29 = scalar_lea.hbm %s1071_s17, 8064  ;;  %s746_s25 = scalar_lea.hbm %s1126_s2, 32256 }
  0xfe   : > { %p743_p5 = scmp.ne.s32.totalorder %s1071_s17, %s742_s29  ;;  %p747_p1 = scmp.lt.u32.totalorder %s1071_s17, %s1126_s2 }
  0xff   : > { %p748_p3 = scmp.lt.u32.totalorder %s746_s25, %s742_s29  ;;  %p750_p6 = scmp.lt.u32.totalorder %s742_s29, %s1071_s17 }
 0x100   : > { %p744_p7 = pnand %p743_p5, %p1133_p11 }
 0x101   : > { %p749_p10 = por %p748_p3, %p747_p1 }
 0x102   : > { %p745_p13 = pneg %p744_p7 }
 0x103   : > { %p751_p12 = por %p750_p6, %p749_p10 }
 0x105   : > { %p752_p8 = pnand %p751_p12, %p745_p13 }
 0x107   : > { %755 = shalt.err (!%p752_p8)
}
 0x108   : > { %s801_s3 = smov 896   ;;  %s802_s6 = smov 56  }
 0x109   : > { %609 = dma.vmem_to_hbm [thread:$0]  (%p1133_p11), %s1073_s8, 8064, %s1071_s17, %s486_s13, %s801_s3, %s801_s3, %s802_s6  }
 0x10a PF: > { %p622_p9 = scmp.ge.s32.totalorder %s794_s12, 2  ;;  %s515_s19 = sand.u32 1, %s782_s9  }
 0x10b   : > { %p1134_p0 = scmp.ne.s32.totalorder %s1130_s21, 0  ;;  %s516_s7 = scalar_lea.sflag [#allocation4], %s515_s19 }
 0x10d   : > { %p616_p2 = pnand %p622_p9, %p1134_p0 }
 0x10f   : > { %777 = dma.done.wait (!%p616_p2), %s516_s7, 8064  }
 0x110   : > { %779 = vsyncadd (!%p616_p2), %s516_s7, 4294959232  ;;  %p15_p4 = scmp.ge.s32.totalorder %s843_s15, 6   ;;  %s1135_s9 = smov %s786_s10 }
 0x111   : > { %s1136_s10 = smov %s790_s11  ;;  %s1137_s11 = smov %s855_s18 }
 0x112   : > { %s1138_s12 = smov %s843_s15  ;;  %17 = sbr.rel (!%p15_p4) target bundleno = 5 (0x5), region = 76 }
 0x119   :  { %521 = vsyncpa [#allocation3], 1 }
 0x11a   :  { %523 = vsyncpa [#allocation3 + $0x1], 1 }
 0x11b   :  { %524 = vsyncpa [#allocation4], 1 }
 0x11c   :  { %526 = vsyncpa [#allocation4 + $0x1], 1 }

</bundles_post_ra>
